<compile_context>
chip_gen: v7x
topology: tpu7x:2x2x1
jax: 0.10.0
libtpu: 0.0.40
codegen_flags: <defaults>
</compile_context>

<pallas_src>
import functools

import jax
import jax.numpy as jnp
from jax.experimental import pallas as pl
from jax.experimental.pallas import tpu as pltpu

_TARGET_BYTES = 4 * 1024 * 1024   # ~4 MiB per pipeline buffer (all generations)
_MIN_GRID_STEPS = 4               # keep both v7x TensorCores busy


def _layernorm_kernel(x_ref, gamma_ref, o_ref, *, eps):
    # x_ref: (TB, C, TS)   gamma_ref: (1, C, 1)   o_ref: (TB, C, TS)
    # Reduction is over the channel (sublane) axis; lanes are independent
    # spatial positions and the leading dim is independent batch elements, so
    # ragged edge blocks are correct (padded lanes/rows are masked on store).
    x = x_ref[...].astype(jnp.float32)  # no-op when x is already f32
    mean = jnp.mean(x, axis=1, keepdims=True)
    centered = x - mean
    var = jnp.mean(centered * centered, axis=1, keepdims=True)  # unbiased=False
    inv = jax.lax.rsqrt(var + eps)
    g = gamma_ref[...].astype(jnp.float32)  # resident, broadcast per tile
    o_ref[...] = (centered * inv * g).astype(o_ref.dtype)


def _choose_tiling(B, C, S, itemsize, target_bytes=_TARGET_BYTES,
                   min_steps=_MIN_GRID_STEPS):
    """Pick (TB, TS): batch-block and lane-dense spatial-block sizes."""
    bytes_per_pos = C * itemsize
    full_row = S * bytes_per_pos  # one batch element, full spatial extent

    if full_row > target_bytes:
        # Tile along the (lane-dense) spatial axis.
        tb = 1
        ts = max(128, (target_bytes // bytes_per_pos) // 128 * 128)
        # Prefer the largest 128-multiple divisor of S within budget so every
        # store stays unmasked; otherwise fall back to cdiv + masked edge tile.
        d = ts
        while d >= 128:
            if S % d == 0:
                ts = d
                break
            d -= 128
        ts = min(ts, S)
    else:
        # Whole spatial extent fits: fold several batch elements per step.
        ts = S
        tb = max(1, min(B, target_bytes // max(full_row, 1)))

    def n_steps(tb_, ts_):
        return pl.cdiv(B, tb_) * pl.cdiv(S, ts_)

    # Guarantee a multi-step grid for v7x megacore sharding (no effect on the
    # single-TC v5e/v6e; only triggers when the tensor is small anyway).
    while n_steps(tb, ts) < min_steps:
        if tb > 1:
            tb = max(1, tb // 2)
        elif ts > 128:
            new_ts = max(128, ((ts // 2 + 127) // 128) * 128)
            if new_ts >= ts:
                break
            ts = new_ts
        else:
            break
    return tb, ts


def layer_norm(x, gamma, eps=1e-5):
    """x: (B, C, F, H, W) NCFHW, gamma: (1, C, 1, 1, 1)."""
    B, C, F, H, W = x.shape
    S = F * H * W
    itemsize = jnp.dtype(x.dtype).itemsize

    # Metadata-only reshape: the reduction axis (C) is untouched and spatial
    # positions stay 1:1, so no HBM transpose is needed.
    xk = x.reshape(B, C, S)
    g = gamma.reshape(1, C, 1)

    TB, TS = _choose_tiling(B, C, S, itemsize)
    grid = (pl.cdiv(B, TB), pl.cdiv(S, TS))

    kernel = functools.partial(_layernorm_kernel, eps=eps)
    cost = pl.CostEstimate(
        flops=7 * B * C * S,
        transcendentals=B * S,
        bytes_accessed=2 * B * C * S * itemsize
        + C * jnp.dtype(gamma.dtype).itemsize,
    )

    out = pl.pallas_call(
        kernel,
        out_shape=jax.ShapeDtypeStruct((B, C, S), x.dtype),
        grid_spec=pltpu.PrefetchScalarGridSpec(
            num_scalar_prefetch=0,
            grid=grid,
            in_specs=[
                pl.BlockSpec((TB, C, TS), lambda b, s: (b, 0, s)),
                pl.BlockSpec((1, C, 1), lambda b, s: (0, 0, 0)),
            ],
            out_specs=pl.BlockSpec((TB, C, TS), lambda b, s: (b, 0, s)),
        ),
        compiler_params=pltpu.CompilerParams(
            dimension_semantics=("parallel", "parallel"),
            # 2x(in+out) ~4 MiB buffers ~= 16 MiB in flight; 48 MiB leaves
            # headroom, exceeds v5e's 16 MiB scoped default, and stays under
            # v7x's 64 MiB physical VMEM.
            vmem_limit_bytes=48 * 1024 * 1024,
        ),
        cost_estimate=cost,
    )(xk, g)

    return out.reshape(B, C, F, H, W)


if __name__ == "__main__":
    key = jax.random.PRNGKey(0)
    B, C, F, H, W = 2, 8, 4, 8, 16
    x = jax.random.normal(key, (B, C, F, H, W), dtype=jnp.float32)
    # Module __init__: gamma = nn.Parameter(torch.ones(1, dim, 1, 1, 1))
    gamma = jnp.ones((1, C, 1, 1, 1), dtype=jnp.float32)

    out = jax.block_until_ready(layer_norm(x, gamma))

    # Pure-JAX reference check.
    mean = jnp.mean(x, axis=1, keepdims=True)
    var = jnp.mean((x - mean) ** 2, axis=1, keepdims=True)
    ref = (x - mean) / jnp.sqrt(var + 1e-5) * gamma
    assert out.shape == x.shape and out.dtype == x.dtype
    assert jnp.allclose(out, ref, atol=1e-5, rtol=1e-5)

    print("KERNEL_OK")
</pallas_src>

<mosaic_0001>
module attributes {stable_mosaic.version = 11 : i64} {
  func.func @_layernorm_kernel(%arg0: i32, %arg1: i32, %arg2: memref<1x8x256xf32, #tpu.memory_space<vmem>>, %arg3: memref<1x8x1xf32, #tpu.memory_space<vmem>>, %arg4: memref<1x8x256xf32, #tpu.memory_space<vmem>>) attributes {dimension_semantics = [#tpu.dimension_semantics<parallel>, #tpu.dimension_semantics<parallel>], iteration_bounds = array<i64: 2, 2>, scalar_prefetch = 0 : i64, scratch_operands = 0 : i64, tpu.core_type = #tpu.core_type<tc>, window_params = [{transform_indices = @transform_0, window_bounds = array<i64: 1, 8, 256>}, {pipeline_mode = #tpu.pipeline_mode<synchronous>, transform_indices = @transform_1, window_bounds = array<i64: 1, 8, 1>}, {transform_indices = @transform_2, window_bounds = array<i64: 1, 8, 256>}]} {
    %c0 = arith.constant 0 : index
    %c0_0 = arith.constant 0 : index
    %c0_1 = arith.constant 0 : index
    %0 = vector.load %arg2[%c0, %c0_0, %c0_1] : memref<1x8x256xf32, #tpu.memory_space<vmem>>, vector<1x8x256xf32>
    %cst = arith.constant dense<0.000000e+00> : vector<1x256xf32>
    %1 = vector.multi_reduction <add>, %0, %cst [1] : vector<1x8x256xf32> to vector<1x256xf32>
    %2 = vector.shape_cast %1 : vector<1x256xf32> to vector<1x1x256xf32>
    %cst_2 = arith.constant 8.000000e+00 : f32
    %3 = vector.broadcast %cst_2 : f32 to vector<1x1x256xf32>
    %4 = arith.divf %2, %3 : vector<1x1x256xf32>
    %5 = vector.broadcast %4 : vector<1x1x256xf32> to vector<1x8x256xf32>
    %6 = arith.subf %0, %5 : vector<1x8x256xf32>
    %7 = arith.mulf %6, %6 : vector<1x8x256xf32>
    %cst_3 = arith.constant dense<0.000000e+00> : vector<1x256xf32>
    %8 = vector.multi_reduction <add>, %7, %cst_3 [1] : vector<1x8x256xf32> to vector<1x256xf32>
    %9 = vector.shape_cast %8 : vector<1x256xf32> to vector<1x1x256xf32>
    %cst_4 = arith.constant 8.000000e+00 : f32
    %10 = vector.broadcast %cst_4 : f32 to vector<1x1x256xf32>
    %11 = arith.divf %9, %10 : vector<1x1x256xf32>
    %cst_5 = arith.constant 9.99999974E-6 : f32
    %12 = vector.broadcast %cst_5 : f32 to vector<1x1x256xf32>
    %13 = arith.addf %11, %12 : vector<1x1x256xf32>
    %14 = math.rsqrt %13 : vector<1x1x256xf32>
    %c0_6 = arith.constant 0 : index
    %c0_7 = arith.constant 0 : index
    %c0_8 = arith.constant 0 : index
    %15 = vector.load %arg3[%c0_6, %c0_7, %c0_8] : memref<1x8x1xf32, #tpu.memory_space<vmem>>, vector<1x8x1xf32>
    %16 = vector.broadcast %14 : vector<1x1x256xf32> to vector<1x8x256xf32>
    %17 = arith.mulf %6, %16 : vector<1x8x256xf32>
    %18 = vector.broadcast %15 : vector<1x8x1xf32> to vector<1x8x256xf32>
    %19 = arith.mulf %17, %18 : vector<1x8x256xf32>
    %c0_9 = arith.constant 0 : index
    %c0_10 = arith.constant 0 : index
    %c0_11 = arith.constant 0 : index
    %20 = vector.load %arg4[%c0_9, %c0_10, %c0_11] : memref<1x8x256xf32, #tpu.memory_space<vmem>>, vector<1x8x256xf32>
    tpu.vector_store %arg4[%c0_9, %c0_10, %c0_11], %19 {strides = array<i32>} : memref<1x8x256xf32, #tpu.memory_space<vmem>>, vector<1x8x256xf32>,
    return
  }
  func.func @transform_0(%arg0: i32, %arg1: i32) -> (i32, i32, i32) {
    %c0_i32 = arith.constant 0 : i32
    %c0_i32_0 = arith.constant 0 : i32
    return %arg0, %c0_i32, %arg1 : i32, i32, i32
  }
  func.func @transform_1(%arg0: i32, %arg1: i32) -> (i32, i32, i32) {
    %c0_i32 = arith.constant 0 : i32
    %c0_i32_0 = arith.constant 0 : i32
    %c0_i32_1 = arith.constant 0 : i32
    %c0_i32_2 = arith.constant 0 : i32
    return %c0_i32, %c0_i32_0, %c0_i32_1 : i32, i32, i32
  }
  func.func @transform_2(%arg0: i32, %arg1: i32) -> (i32, i32, i32) {
    %c0_i32 = arith.constant 0 : i32
    %c0_i32_0 = arith.constant 0 : i32
    return %arg0, %c0_i32, %arg1 : i32, i32, i32
  }
}

</mosaic_0001>

<bundles_post_ra>
// kernel: tpu_custom_call.1
= control target key start
LH: loop header
LB: loop body
LE: loop exit
PB: predicated region body
PF: predicated region fallthrough
CT: control target
= control target key end

     0   :  { %7 = vsyncpa [#allocation3], 0  ;;  %s785_s0 = inlined_call_operand.hbm [shape: f32[2,8,512], index: 0, kind: input, shape index: {}]   ;;  %s786_s1 = inlined_call_operand.vmem [shape: f32[1,8,1], index: 1, kind: input, shape index: {}]   ;;  %s787_s2 = inlined_call_operand.hbm [shape: f32[2,8,512], index: 2, kind: output, shape index: {}]  }
   0x1   :  { %9 = vsyncpa [#allocation3 + $0x1], 0 }
   0x2   :  { %10 = vsyncpa [#allocation4], 0 }
   0x3   :  { %12 = vsyncpa [#allocation4 + $0x1], 0  ;;  %s584_s9 = smov 0   ;;  %s586_s10 = smov 0  }
   0x4   :  { %s588_s11 = smov 0   ;;  %s590_s12 = smov 0  }
   0x5   :  { %s592_s13 = smov 0   ;;  %s594_s14 = smov 0  }
   0x6   :  { %s596_s15 = smov 0   ;;  %s598_s16 = smov 0  }
   0x7 LB: > { %s335_s17 = sadd.s32 4294967295, %s564_s16   ;;  %s336_s18 = sadd.s32 4294967294, %s564_s16   ;;  %s564_s16 = sphi %s598_s16, %s18_s16   ;;  %s560_s15 = sphi %s596_s15, %s804_s15   ;;  %s556_s14 = sphi %s594_s14, %s803_s14   ;;  %s552_s13 = sphi %s592_s13, %s802_s13   ;;  %s548_s12 = sphi %s590_s12, %s801_s12   ;;  %s544_s11 = sphi %s588_s11, %s800_s11   ;;  %s540_s10 = sphi %s586_s10, %s799_s10   ;;  %s536_s9 = sphi %s584_s9, %s798_s9  }
   0x8   : > { %s27_s19 = sadd.s32 1, %s556_s14  ;;  %s30_s20 = sadd.s32 1, %s560_s15 }
   0x9   : > { %p28_p0 = scmp.ge.s32.totalorder %s27_s19, 2  ;;  %s39_s21 = sadd.s32 1, %s544_s11 }
   0xa   : > { %p46_p1 = scmp.ne.s32.totalorder %s544_s11, %s540_s10  ;;  %p47_p2 = scmp.eq.s32.totalorder %s564_s16, 0 }
   0xb   : > { %s806_s19 = smov (%p28_p0, %s27_s19), 0  ;;  %s808_s20 = smov (!%p28_p0, %s30_s20), %s560_s15 }
   0xc   : > { %s35_s22 = ssub.s32 %s556_s14, %s806_s19  ;;  %p637_p3 = por %p47_p2, %p46_p1 }
   0xd   : > { %p32_p4 = scmp.ge.s32.totalorder %s808_s20, 2  ;;  %p52_p5 = scmp.ne.s32.totalorder %s540_s10, %s536_s9 }
   0xe   : > { %p53_p6 = scmp.eq.s32.totalorder %s335_s17, 0  ;;  %p99_p7 = scmp.eq.s32.totalorder %s335_s17, 3 }
   0xf   : > { %s810_s20 = smov (%p32_p4, %s808_s20), 0  ;;  %p105_p10 = scmp.eq.s32.totalorder %s336_s18, 3 }
  0x10   : > { %p645_p8 = por %p53_p6, %p52_p5  ;;  %p649_p9 = por %p99_p7, %p46_p1 }
  0x11   : > { %s34_s26 = ssub.s32 %s560_s15, %s810_s20  ;;  %p655_p12 = por %p105_p10, %p52_p5 }
  0x12   : > { %s791_s25 = scalar_select %p649_p9, 1, 0 }
  0x13   : > { %s36_s27 = sor.u32 %s35_s22, %s34_s26  ;;  %p364_p13 = scmp.lt.s32.totalorder %s564_s16, 4 }
  0x14   : > { %p37_p11 = scmp.eq.s32.totalorder %s36_s27, 0  ;;  %s128_s29 = sand.u32 1, %s544_s11  }
  0x15   : > { %s792_s28 = scalar_select %p655_p12, 1, 0 }
  0x16   : > { %s662_s30 = scalar_select %p37_p11, %s544_s11, %s39_s21  }
  0x17   : > { %s339_s3 = sshll.u32 %s128_s29, 4  ;;  %s340_s4 = sshll.u32 %s556_s14, 1 }
  0x18   : > { %s341_s5 = sshll.u32 %s560_s15, 2  ;;  %s132_s6 = scalar_lea.vmem [#allocation2], %s339_s3 }
  0x19   : > { %s142_s7 = sshll.u32 %s132_s6, 4  ;;  %s138_s8 = sadd.s32 %s341_s5, %s340_s4  ;;  %s666_s7 = int_to_ptr.vmem [resolvable:$true] %s142_s7 }
  0x1a   : > { %s342_s17 = sshll.u32 %s138_s8, 7  ;;  %p670_p0 = pnand %p364_p13, %p637_p3 }
  0x1b   : > { %s677_s21 = scalar_lea.hbm %s785_s0, %s342_s17  ;;  %s129_s27 = scalar_lea.sflag [#allocation3], %s128_s29 }
  0x1c   : > { %s436_s3 = scalar_lea.hbm %s677_s21, 256  ;;  %p438_p3 = pneg %p670_p0 }
  0x1d   : > { %p437_p4 = scmp.ne.s32.totalorder %s677_s21, %s436_s3  ;;  %s441_s5 = scalar_lea.hbm %s785_s0, 1024 }
  0x1e   : > { %p442_p7 = scmp.lt.u32.totalorder %s677_s21, %s785_s0  ;;  %p443_p10 = scmp.lt.u32.totalorder %s441_s5, %s436_s3 }
  0x1f   : > { %p439_p5 = pnand %p438_p3, %p437_p4  ;;  %p445_p13 = scmp.lt.u32.totalorder %s436_s3, %s677_s21 }
  0x20   : > { %p444_p11 = por %p443_p10, %p442_p7 }
  0x21   : > { %p440_p6 = pneg %p439_p5 }
  0x22   : > { %p446_p1 = por %p445_p13, %p444_p11 }
  0x24   : > { %p447_p2 = pnand %p446_p1, %p440_p6 }
  0x26   : > { %450 = shalt.err (!%p447_p2)
}
  0x27   : > { %s451_s29 = scalar_lea.vmem %s666_s7, 256  ;;  %s566_s17 = smov [#allocation2]  }
  0x28   : > { %p452_p4 = scmp.ne.s32.totalorder %s666_s7, %s451_s29  ;;  %s456_s22 = sshll.u32 %s566_s17, 4  ;;  %s457_s22 = int_to_ptr.vmem [resolvable:$false] %s456_s22 }
  0x29   : > { %s458_s26 = scalar_lea.vmem %s457_s22, 512  ;;  %p459_p9 = scmp.lt.s32.totalorder %s666_s7, %s457_s22 }
  0x2a   : > { %p454_p5 = pnand %p452_p4, %p438_p3  ;;  %p460_p7 = scmp.lt.s32.totalorder %s458_s26, %s451_s29 }
  0x2c   : > { %p455_p12 = pneg %p454_p5  ;;  %p461_p10 = por %p460_p7, %p459_p9 }
  0x2e   : > { %p462_p11 = pnand %p461_p10, %p455_p12 }
  0x30   : > { %465 = shalt.err (!%p462_p11)
}
  0x31   : > { %359 = dma.hbm_to_vmem [thread:$0]  (!%p670_p0), %s677_s21, 256, %s666_s7, %s129_s27  }
  0x32   : > { %p794_p1 = scmp.lt.s32.totalorder %s564_s16, 5  ;;  %p795_p2 = scmp.ge.s32.totalorder %s564_s16, 1 }
  0x34   : > { %p148_p3 = pnand %p795_p2, %p794_p1 }
  0x35   : > { %s711_s3 = sand.u32 (!%p148_p3), 1, %s540_s10  }
  0x36   : > { %151 = sbr.rel (%p148_p3) target bundleno = 208 (0xd0), region = 28  ;;  %s344_s23 = sshll.u32 (!%p148_p3), %s711_s3, 4 }
  0x37   : > { %s154_s4 = scalar_lea.sflag (!%p148_p3), [#allocation3], %s711_s3  ;;  %s157_s18 = scalar_lea.vmem (!%p148_p3), [#allocation2], %s344_s23 }
  0x3d   : > { %527 = dma.done.wait (%p645_p8), %s154_s4, 256  }
  0x3e   : > { %529 = vsyncadd (%p645_p8), %s154_s4, 4294967040  ;;  %v567_v0 = vmov 0   ;;  %v219_v1 = vld [vmem:[%s786_s1] sm:$0xff]  ;;  %v181_v3 = vld [vmem:[%s157_s18 + $0x8] sm:$0xff]  ;;  %s347_s24 = sshll.u32 %s548_s12, 1  ;;  %s348_s27 = sshll.u32 %s552_s13, 2 }
  0x3f   : > { %431 = vset.pattern.permute.xlu0 %v567_v0  ;;  %v180_v2 = vld [vmem:[%s157_s18] sm:$0xff]  ;;  %v188_v5 = vrot.slane %v181_v3, 4  ;;  %s244_s5 = sadd.s32 %s348_s27, %s347_s24  ;;  %s177_s8 = scalar_lea.vmem [#allocation5], %s344_s23 }
  0x40   : > { %224 = vperm.xlu0 %431, %v219_v1   ;;  %v182_v4 = vrot.slane %v180_v2, 4  ;;  %s349_s6 = sshll.u32 %s244_s5, 7  ;;  %s248_s29 = sshll.u32 %s177_s8, 4  ;;  %s733_s29 = int_to_ptr.vmem [resolvable:$true] %s248_s29 }
  0x41   : > { %v189_v7 = vadd.f32 %v188_v5, %v181_v3  ;;  %s731_s26 = scalar_lea.hbm %s787_s2, %s349_s6  ;;  %s232_s12 = scalar_lea.sflag [#allocation4], %s711_s3 }
  0x42   : > { %v183_v6 = vadd.f32 %v182_v4, %v180_v2  ;;  %s466_s13 = scalar_lea.vmem %s733_s29, 256  ;;  %p796_p9 = scmp.ne.s32.totalorder %s791_s25, 0 }
  0x43   : > { %v190_v9 = vrot.slane %v189_v7, 2  ;;  %p467_p8 = scmp.ne.s32.totalorder %s733_s29, %s466_s13  ;;  %s568_s23 = smov [#allocation5]  }
  0x44   : > { %v184_v8 = vrot.slane %v183_v6, 2  ;;  %s470_s4 = sshll.u32 %s568_s23, 4  ;;  %s471_s4 = int_to_ptr.vmem [resolvable:$false] %s470_s4 }
  0x45   : > { %v191_v11 = vadd.f32 %v190_v9, %v189_v7  ;;  %p468_p12 = pnand %p467_p8, %p796_p9  ;;  %s472_s18 = scalar_lea.vmem %s471_s4, 512 }
  0x46   : > { %v185_v10 = vadd.f32 %v184_v8, %v183_v6  ;;  %p473_p6 = scmp.lt.s32.totalorder %s733_s29, %s471_s4  ;;  %p474_p13 = scmp.lt.s32.totalorder %s472_s18, %s466_s13 }
  0x47   : > { %v192_v13 = vrot.slane %v191_v11, 1  ;;  %p469_p0 = pneg %p468_p12 }
  0x48   : > { %v186_v12 = vrot.slane %v185_v10, 1  ;;  %p475_p4 = por %p474_p13, %p473_p6 }
  0x49   : > { %v193_v15 = vadd.f32 %v192_v13, %v191_v11 }
  0x4a   : > { %v187_v14 = vadd.f32 %v186_v12, %v185_v10  ;;  %p476_p5 = pnand %p475_p4, %p469_p0 }
  0x4b   : > { %v196_v17 = vmul.f32 0.125, %v193_v15 }
  0x4c   : > { %v195_v16 = vmul.f32 0.125, %v187_v14 }
  0x4d   : > { %v198_v19 = vsub.f32 %v181_v3, %v196_v17 }
  0x4e   : > { %v197_v18 = vsub.f32 %v180_v2, %v195_v16 }
  0x4f   : > { %v200_v21 = vmul.f32 %v198_v19, %v198_v19 }
  0x50   : > { %v199_v20 = vmul.f32 %v197_v18, %v197_v18 }
  0x51   : > { %v207_v23 = vrot.slane %v200_v21, 4 }
  0x52   : > { %v201_v22 = vrot.slane %v199_v20, 4 }
  0x53   : > { %v208_v25 = vadd.f32 %v207_v23, %v200_v21 }
  0x54   : > { %v202_v24 = vadd.f32 %v201_v22, %v199_v20 }
  0x55   : > { %v209_v27 = vrot.slane %v208_v25, 2 }
  0x56   : > { %v203_v26 = vrot.slane %v202_v24, 2 }
  0x57   : > { %v210_v29 = vadd.f32 %v209_v27, %v208_v25 }
  0x58   : > { %v204_v28 = vadd.f32 %v203_v26, %v202_v24 }
  0x59   : > { %v211_v31 = vrot.slane %v210_v29, 1 }
  0x5a   : > { %v205_v30 = vrot.slane %v204_v28, 1 }
  0x5b   : > { %v212_v33 = vadd.f32 %v211_v31, %v210_v29 }
  0x5c   : > { %v206_v32 = vadd.f32 %v205_v30, %v204_v28 }
  0x5d   : > { %v214_v35 = vmul.f32 0.125, %v212_v33 }
  0x5e   : > { %v213_v34 = vmul.f32 0.125, %v206_v32 }
  0x5f   : > { %v216_v37 = vadd.f32 1e-05, %v214_v35 }
  0x60   : > { %v215_v36 = vadd.f32 1e-05, %v213_v34 }
  0x62   : > { %432 = vrsqrt.f32 %v215_v36 }
  0x63   : > { %434 = vrsqrt.f32 %v216_v37 }
  0x6c   : > { %v433_v38 = vpop.eup %432 }
  0x6d   : > { %v435_v39 = vpop.eup %434  ;;  %v220_v40 = vmul.f32 %v433_v38, %v197_v18 }
  0x6e   : > { %v221_v41 = vmul.f32 %v435_v39, %v198_v19 }
  0xbf   : > { %v225_v42 = vpop.permute.xlu0 %224 }
  0xc0   : > { %v227_v43 = vmul.f32 %v225_v42, %v220_v40  ;;  %v228_v44 = vmul.f32 %v225_v42, %v221_v41 }
  0xc2   : > { %229 = vst [vmem:[%s177_s8] sm:$0xff] %v227_v43  ;;  %230 = vst [vmem:[%s177_s8 + $0x8] sm:$0xff] %v228_v44 }
  0xc3   : > { %479 = shalt.err (!%p476_p5)
}
  0xc4   : > { %s480_s3 = scalar_lea.hbm %s731_s26, 256  ;;  %s484_s24 = scalar_lea.hbm %s787_s2, 1024 }
  0xc5   : > { %p481_p7 = scmp.ne.s32.totalorder %s731_s26, %s480_s3  ;;  %p485_p1 = scmp.lt.u32.totalorder %s731_s26, %s787_s2 }
  0xc6   : > { %p486_p2 = scmp.lt.u32.totalorder %s484_s24, %s480_s3  ;;  %p488_p8 = scmp.lt.u32.totalorder %s480_s3, %s731_s26 }
  0xc7   : > { %p482_p10 = pnand %p481_p7, %p796_p9 }
  0xc8   : > { %p487_p3 = por %p486_p2, %p485_p1 }
  0xc9   : > { %p483_p11 = pneg %p482_p10 }
  0xca   : > { %p489_p12 = por %p488_p8, %p487_p3 }
  0xcc   : > { %p490_p0 = pnand %p489_p12, %p483_p11 }
  0xce   : > { %493 = shalt.err (!%p490_p0)
}
  0xcf   : > { %354 = dma.vmem_to_hbm [thread:$0]  (%p796_p9), %s733_s29, 256, %s731_s26, %s232_s12  }
  0xd0 PF: > { %p365_p6 = scmp.ge.s32.totalorder %s564_s16, 2  ;;  %s260_s6 = sand.u32 1, %s536_s9  }
  0xd1   : > { %p797_p13 = scmp.ne.s32.totalorder %s792_s28, 0  ;;  %s261_s8 = scalar_lea.sflag [#allocation4], %s260_s6 }
  0xd3   : > { %p361_p4 = pnand %p365_p6, %p797_p13 }
  0xd5   : > { %531 = dma.done.wait (!%p361_p4), %s261_s8, 256  }
  0xd6   : > { %533 = vsyncadd (!%p361_p4), %s261_s8, 4294967040  ;;  %s18_s16 = sadd.s32 1, %s564_s16   ;;  %s798_s9 = smov %s540_s10 }
  0xd7   : > { %p15_p5 = scmp.ge.s32.totalorder %s18_s16, 6   ;;  %s799_s10 = smov %s544_s11 }
  0xd8   : > { %s800_s11 = smov %s662_s30  ;;  %s801_s12 = smov %s556_s14 }
  0xd9   : > { %s802_s13 = smov %s560_s15  ;;  %s803_s14 = smov %s806_s19 }
  0xda   : > { %s804_s15 = smov %s810_s20  ;;  %17 = sbr.rel (!%p15_p5) target bundleno = 7 (0x7), region = 73 }
  0xe1   :  { %266 = vsyncpa [#allocation3], 1 }
  0xe2   :  { %268 = vsyncpa [#allocation3 + $0x1], 1 }
  0xe3   :  { %269 = vsyncpa [#allocation4], 1 }
  0xe4   :  { %271 = vsyncpa [#allocation4 + $0x1], 1 }

</bundles_post_ra>
